<compile_context>
chip_gen: v6e
topology: v6e:2x2x1
jax: 0.10.0
libtpu: 0.0.40
codegen_flags: <defaults>
</compile_context>

<pallas_src>
import functools
import math

import jax
import jax.numpy as jnp
import numpy as np
from jax.experimental import pallas as pl
from jax.experimental.pallas import tpu as pltpu

FULL_ATOM_FEATURE_DIMS = [129, 19, 22, 22, 20, 16, 16, 12, 12]

# Static per-feature row offsets into the concatenated table, and the padded
# vocabulary size (lane-aligned to 128).
_OFFSETS = tuple(int(o) for o in np.cumsum([0] + FULL_ATOM_FEATURE_DIMS[:-1]))
_TOTAL_V = sum(FULL_ATOM_FEATURE_DIMS)  # 268


def _round_up(x, m):
    return (x + m - 1) // m * m


_VPAD = _round_up(_TOTAL_V, 128)  # 384


def atom_encoder_kernel(offs_ref, x_ref, table_ref, out_ref):
    """offs_ref: [1, F] int32 table row offsets; x_ref: [tT, F] int32 raw ids;
    table_ref: [Vpad, E] f32 concatenated tables; out_ref: [tT, E] f32."""
    idx = x_ref[...]                                  # [tT, F]
    tT, F = idx.shape
    Vpad = table_ref.shape[0]

    # Offset raw feature ids into the concatenated table (one VPU pass).
    gidx = idx + offs_ref[...]                        # [tT, F]

    # Multi-hot [tT, Vpad]: per-feature ranges are disjoint, so OR the 9
    # one-hot masks and convert to float once (instead of 9 convert+add).
    col = jax.lax.broadcasted_iota(jnp.int32, (tT, Vpad), 1)
    hot = col == gidx[:, 0:1]
    for f in range(1, F):                             # static, F = 9
        hot = jnp.logical_or(hot, col == gidx[:, f:f + 1])
    multi_hot = hot.astype(jnp.float32)

    # Sum of embeddings == multi_hot @ concatenated_table (single MXU matmul).
    out_ref[...] = jnp.dot(multi_hot, table_ref[...],
                           preferred_element_type=jnp.float32)


def make_atom_encoder_params(key, emb_dim):
    """Deterministic xavier_uniform init for each table (padding row is NOT
    zeroed — matches the PyTorch module, where xavier_uniform_ overwrites the
    padding_idx zeroing and padding_idx does not affect the forward pass)."""
    tables = []
    for i, dim in enumerate(FULL_ATOM_FEATURE_DIMS):
        k = jax.random.fold_in(key, i)
        bound = math.sqrt(6.0 / (dim + emb_dim))
        tables.append(jax.random.uniform(k, (dim, emb_dim), jnp.float32,
                                         minval=-bound, maxval=bound))
    return tables


def build_concat_table(tables, emb_dim):
    """Concatenate the 9 tables into a single [Vpad, E] table; padded rows stay
    zero and are never indexed."""
    big = jnp.zeros((_VPAD, emb_dim), jnp.float32)
    for off, t in zip(_OFFSETS, tables):
        big = big.at[off:off + t.shape[0]].set(t)
    return big


@functools.partial(jax.jit, static_argnames=("tT",))
def atom_encoder_forward(x, big_table, *, tT=512):
    """x: [B, N, F] int32.  big_table: [Vpad, E] f32.  Returns [B, N, E] f32."""
    B, N, F = x.shape
    Vpad, E = big_table.shape
    T = B * N

    # Large token tile (amortizes ~0.35us/step overhead, fills the MXU M dim);
    # clamp for tiny inputs, keep a multiple of 8 (sublane granularity).
    tT = min(tT, _round_up(T, 8))
    Tpad = _round_up(T, tT)

    x2d = x.reshape(T, F).astype(jnp.int32)
    if Tpad != T:
        # Padded rows read table row 0 per feature and are sliced off below.
        x2d = jnp.pad(x2d, ((0, Tpad - T), (0, 0)))

    offs2d = jnp.asarray([_OFFSETS], dtype=jnp.int32)  # [1, F]

    out = pl.pallas_call(
        atom_encoder_kernel,
        out_shape=jax.ShapeDtypeStruct((Tpad, E), jnp.float32),
        grid_spec=pltpu.PrefetchScalarGridSpec(
            num_scalar_prefetch=0,
            grid=(Tpad // tT,),
            in_specs=[
                pl.BlockSpec((1, F), lambda i: (0, 0)),      # row offsets
                pl.BlockSpec((tT, F), lambda i: (i, 0)),     # token feature ids
                pl.BlockSpec((Vpad, E), lambda i: (0, 0)),   # whole table (resident)
            ],
            out_specs=pl.BlockSpec((tT, E), lambda i: (i, 0)),
        ),
        compiler_params=pltpu.CompilerParams(
            dimension_semantics=("parallel",)),
    )(offs2d, x2d, big_table)

    return out[:T].reshape(B, N, E)


def reference_forward(x, tables):
    out = 0
    for i in range(x.shape[-1]):
        out = out + jnp.take(tables[i], x[:, :, i], axis=0)
    return out


if __name__ == "__main__":
    key = jax.random.PRNGKey(0)
    emb_dim = 32
    B, N, F = 2, 8, len(FULL_ATOM_FEATURE_DIMS)

    # Parameters (deterministic).
    tables = make_atom_encoder_params(key, emb_dim)
    big_table = build_concat_table(tables, emb_dim)

    # Example input: categorical atom features within each table's range.
    xkey = jax.random.fold_in(key, 1000)
    x = jnp.stack(
        [jax.random.randint(jax.random.fold_in(xkey, i), (B, N), 0, dim,
                            dtype=jnp.int32)
         for i, dim in enumerate(FULL_ATOM_FEATURE_DIMS)],
        axis=-1)  # [B, N, F]

    out = atom_encoder_forward(x, big_table)
    out = jax.block_until_ready(out)

    ref = reference_forward(x, tables)
    assert out.shape == (B, N, emb_dim)
    assert jnp.allclose(out, ref, atol=1e-5, rtol=1e-5), "mismatch vs reference"

    print("KERNEL_OK")
</pallas_src>

<mosaic_0001>
module attributes {stable_mosaic.version = 11 : i64} {
  func.func @atom_encoder_kernel(%arg0: i32, %arg1: memref<1x9xi32, #tpu.memory_space<vmem>>, %arg2: memref<16x9xi32, #tpu.memory_space<vmem>>, %arg3: memref<384x32xf32, #tpu.memory_space<vmem>>, %arg4: memref<16x32xf32, #tpu.memory_space<vmem>>) attributes {dimension_semantics = [#tpu.dimension_semantics<parallel>], iteration_bounds = array<i64: 1>, scalar_prefetch = 0 : i64, scratch_operands = 0 : i64, tpu.core_type = #tpu.core_type<tc>, window_params = [{pipeline_mode = #tpu.pipeline_mode<synchronous>, transform_indices = @transform_0, window_bounds = array<i64: 1, 9>}, {transform_indices = @transform_1, window_bounds = array<i64: 16, 9>}, {pipeline_mode = #tpu.pipeline_mode<synchronous>, transform_indices = @transform_2, window_bounds = array<i64: 384, 32>}, {transform_indices = @transform_3, window_bounds = array<i64: 16, 32>}]} {
    %c0 = arith.constant 0 : index
    %c0_0 = arith.constant 0 : index
    %0 = vector.load %arg2[%c0, %c0_0] : memref<16x9xi32, #tpu.memory_space<vmem>>, vector<16x9xi32>
    %c0_1 = arith.constant 0 : index
    %c0_2 = arith.constant 0 : index
    %1 = vector.load %arg1[%c0_1, %c0_2] : memref<1x9xi32, #tpu.memory_space<vmem>>, vector<1x9xi32>
    %2 = vector.broadcast %1 : vector<1x9xi32> to vector<16x9xi32>
    %3 = arith.addi %0, %2 : vector<16x9xi32>
    %4 = tpu.iota {dimensions = array<i32: 1>} : vector<16x384xi32>
    %5 = vector.extract_strided_slice %3 {offsets = [0, 0], sizes = [16, 1], strides = [1, 1]} : vector<16x9xi32> to vector<16x1xi32>
    %6 = vector.broadcast %5 : vector<16x1xi32> to vector<16x384xi32>
    %7 = arith.cmpi eq, %4, %6 : vector<16x384xi32>
    %8 = vector.extract_strided_slice %3 {offsets = [0, 1], sizes = [16, 1], strides = [1, 1]} : vector<16x9xi32> to vector<16x1xi32>
    %9 = vector.broadcast %8 : vector<16x1xi32> to vector<16x384xi32>
    %10 = arith.cmpi eq, %4, %9 : vector<16x384xi32>
    %11 = arith.ori %7, %10 : vector<16x384xi1>
    %12 = vector.extract_strided_slice %3 {offsets = [0, 2], sizes = [16, 1], strides = [1, 1]} : vector<16x9xi32> to vector<16x1xi32>
    %13 = vector.broadcast %12 : vector<16x1xi32> to vector<16x384xi32>
    %14 = arith.cmpi eq, %4, %13 : vector<16x384xi32>
    %15 = arith.ori %11, %14 : vector<16x384xi1>
    %16 = vector.extract_strided_slice %3 {offsets = [0, 3], sizes = [16, 1], strides = [1, 1]} : vector<16x9xi32> to vector<16x1xi32>
    %17 = vector.broadcast %16 : vector<16x1xi32> to vector<16x384xi32>
    %18 = arith.cmpi eq, %4, %17 : vector<16x384xi32>
    %19 = arith.ori %15, %18 : vector<16x384xi1>
    %20 = vector.extract_strided_slice %3 {offsets = [0, 4], sizes = [16, 1], strides = [1, 1]} : vector<16x9xi32> to vector<16x1xi32>
    %21 = vector.broadcast %20 : vector<16x1xi32> to vector<16x384xi32>
    %22 = arith.cmpi eq, %4, %21 : vector<16x384xi32>
    %23 = arith.ori %19, %22 : vector<16x384xi1>
    %24 = vector.extract_strided_slice %3 {offsets = [0, 5], sizes = [16, 1], strides = [1, 1]} : vector<16x9xi32> to vector<16x1xi32>
    %25 = vector.broadcast %24 : vector<16x1xi32> to vector<16x384xi32>
    %26 = arith.cmpi eq, %4, %25 : vector<16x384xi32>
    %27 = arith.ori %23, %26 : vector<16x384xi1>
    %28 = vector.extract_strided_slice %3 {offsets = [0, 6], sizes = [16, 1], strides = [1, 1]} : vector<16x9xi32> to vector<16x1xi32>
    %29 = vector.broadcast %28 : vector<16x1xi32> to vector<16x384xi32>
    %30 = arith.cmpi eq, %4, %29 : vector<16x384xi32>
    %31 = arith.ori %27, %30 : vector<16x384xi1>
    %32 = vector.extract_strided_slice %3 {offsets = [0, 7], sizes = [16, 1], strides = [1, 1]} : vector<16x9xi32> to vector<16x1xi32>
    %33 = vector.broadcast %32 : vector<16x1xi32> to vector<16x384xi32>
    %34 = arith.cmpi eq, %4, %33 : vector<16x384xi32>
    %35 = arith.ori %31, %34 : vector<16x384xi1>
    %36 = vector.extract_strided_slice %3 {offsets = [0, 8], sizes = [16, 1], strides = [1, 1]} : vector<16x9xi32> to vector<16x1xi32>
    %37 = vector.broadcast %36 : vector<16x1xi32> to vector<16x384xi32>
    %38 = arith.cmpi eq, %4, %37 : vector<16x384xi32>
    %39 = arith.ori %35, %38 : vector<16x384xi1>
    %40 = arith.extui %39 : vector<16x384xi1> to vector<16x384xi32>
    %41 = arith.sitofp %40 : vector<16x384xi32> to vector<16x384xf32>
    %c0_3 = arith.constant 0 : index
    %c0_4 = arith.constant 0 : index
    %42 = vector.load %arg3[%c0_3, %c0_4] : memref<384x32xf32, #tpu.memory_space<vmem>>, vector<384x32xf32>
    %cst = arith.constant dense<0.000000e+00> : vector<16x32xf32>
    %43 = tpu.matmul %41, %42, %cst {dimension_numbers = #tpu.dot_dimension_numbers<[1], [0], [0], [1], [0, 0, 1, 1], [], []>} : vector<16x384xf32>, vector<384x32xf32>, vector<16x32xf32> -> vector<16x32xf32>
    %c0_5 = arith.constant 0 : index
    %c0_6 = arith.constant 0 : index
    %44 = vector.load %arg4[%c0_5, %c0_6] : memref<16x32xf32, #tpu.memory_space<vmem>>, vector<16x32xf32>
    tpu.vector_store %arg4[%c0_5, %c0_6], %43 {strides = array<i32>} : memref<16x32xf32, #tpu.memory_space<vmem>>, vector<16x32xf32>,
    return
  }
  func.func @transform_0(%arg0: i32) -> (i32, i32) {
    %c0_i32 = arith.constant 0 : i32
    %c0_i32_0 = arith.constant 0 : i32
    %c0_i32_1 = arith.constant 0 : i32
    return %c0_i32, %c0_i32_0 : i32, i32
  }
  func.func @transform_1(%arg0: i32) -> (i32, i32) {
    %c0_i32 = arith.constant 0 : i32
    %c0_i32_0 = arith.constant 0 : i32
    return %arg0, %c0_i32 : i32, i32
  }
  func.func @transform_2(%arg0: i32) -> (i32, i32) {
    %c0_i32 = arith.constant 0 : i32
    %c0_i32_0 = arith.constant 0 : i32
    %c0_i32_1 = arith.constant 0 : i32
    return %c0_i32, %c0_i32_0 : i32, i32
  }
  func.func @transform_3(%arg0: i32) -> (i32, i32) {
    %c0_i32 = arith.constant 0 : i32
    %c0_i32_0 = arith.constant 0 : i32
    return %arg0, %c0_i32 : i32, i32
  }
}

</mosaic_0001>

<bundles_post_ra>
// kernel: atom_encoder_forward.1
= control target key start
LH: loop header
LB: loop body
LE: loop exit
PB: predicated region body
PF: predicated region fallthrough
CT: control target
= control target key end

     0   :  { %v563_v2 = vmov 2   ;;  %v564_v3 = vmov 1   ;;  %s920_s0 = inlined_call_operand.vmem [shape: s32[1,9], index: 0, kind: input, shape index: {}]   ;;  %s921_s1 = inlined_call_operand.vmem [shape: s32[16,9], index: 1, kind: input, shape index: {}]   ;;  %s922_s2 = inlined_call_operand.vmem [shape: f32[384,32], index: 2, kind: input, shape index: {}]   ;;  %s923_s3 = inlined_call_operand.hbm [shape: f32[16,32], index: 3, kind: output, shape index: {}]  }
   0x1   :  { %v15_v0 = vld [vmem:[%s921_s1] sm:$0xff]  ;;  %526 = vset.pattern.permute.xlu1 %v563_v2  ;;  %524 = vset.pattern.permute.xlu0 %v564_v3 }
   0x2   :  { %v413_v1 = vld [vmem:[%s920_s0] ss:$0 sm:$0xff] }
   0x3   :  { %v602_v4 = vadd.s32 %v413_v1, %v15_v0 }
   0x4   :  { %8 = vsyncpa [#allocation3], 0  ;;  %v16_v5 = vld [vmem:[%s921_s1 + $0x8] sm:$0xff]  ;;  %v565_v6 = vmov 3   ;;  %v566_v7 = vmov 0   ;;  %v567_v9 = vmov 4   ;;  %v24_v62 = vlaneseq }
   0x5   :  { %59 = vperm.xlu1 %526, %v602_v4   ;;  %41 = vperm.xlu0 %524, %v602_v4   ;;  %v611_v8 = vadd.s32 %v413_v1, %v16_v5  ;;  %v227_v10 = vld [vmem:[%s922_s2 + $0xf8] sm:$0xff]  ;;  %v226_v12 = vld [vmem:[%s922_s2 + $0xf0] sm:$0xff]  ;;  %v225_v14 = vld [vmem:[%s922_s2 + $0xe8] sm:$0xff]  ;;  %v568_v15 = vmov 7   ;;  %v569_v17 = vmov 5   ;;  %v570_v23 = vmov 6  }
   0x6   :  { %v211_v11 = vld [vmem:[%s922_s2 + $0x78] sm:$0xff]  ;;  %420 = vmatprep.subr.mxu0 %v227_v10  ;;  %v210_v13 = vld [vmem:[%s922_s2 + $0x70] sm:$0xff]  ;;  %v209_v16 = vld [vmem:[%s922_s2 + $0x68] sm:$0xff]  ;;  %v571_v28 = vmov 8   ;;  %v777_v1 = vand.u32 127, %v24_v62 }
   0x7   :  { %421 = vmatpush3.msra.mxu0 %v211_v11  ;;  %v224_v18 = vld [vmem:[%s922_s2 + $0xe0] sm:$0xff]  ;;  %v243_v20 = vld [vmem:[%s922_s2 + $0x178] sm:$0xff]  ;;  %v222_v24 = vld [vmem:[%s922_s2 + $0xd0] sm:$0xff]  ;;  %v924_v11 = vmov 0 }
   0x8   :  { %422 = vmatprep.subr.mxu0 %v226_v12  ;;  %v208_v19 = vld [vmem:[%s922_s2 + $0x60] sm:$0xff]  ;;  %v223_v21 = vld [vmem:[%s922_s2 + $0xd8] sm:$0xff]  ;;  %476 = vmatprep.subr.mxu1 %v243_v20  ;;  %v242_v25 = vld [vmem:[%s922_s2 + $0x170] sm:$0xff]  ;;  %v783_v5 = vadd.s32 256, %v777_v1  ;;  %v926_v12 = vmov 0 }
   0x9   :  { %527 = vset.pattern.permute.xlu1 %v565_v6  ;;  %525 = vset.pattern.permute.xlu0 %v566_v7  ;;  %v207_v22 = vld [vmem:[%s922_s2 + $0x58] sm:$0xff]  ;;  %v206_v26 = vld [vmem:[%s922_s2 + $0x50] sm:$0xff]  ;;  %v221_v27 = vld [vmem:[%s922_s2 + $0xc8] sm:$0xff] }
   0xa   :  { %77 = vperm.xlu1 %527, %v602_v4   ;;  %29 = vperm.xlu0 %525, %v602_v4   ;;  %v205_v29 = vld [vmem:[%s922_s2 + $0x48] sm:$0xff]  ;;  %v220_v30 = vld [vmem:[%s922_s2 + $0xc0] sm:$0xff]  ;;  %v219_v33 = vld [vmem:[%s922_s2 + $0xb8] sm:$0xff] }
   0xb   :  { %423 = vmatpush3.msra.mxu0 %v210_v13  ;;  %477 = vmatpush3.msra.mxu1 %v243_v20  ;;  %v241_v31 = vld [vmem:[%s922_s2 + $0x168] sm:$0xff]  ;;  %v204_v32 = vld [vmem:[%s922_s2 + $0x40] sm:$0xff]  ;;  %v203_v35 = vld [vmem:[%s922_s2 + $0x38] sm:$0xff]  ;;  %v938_v20 = vmov 0 }
   0xc   :  { %424 = vmatprep.subr.mxu0 %v225_v14  ;;  %478 = vmatprep.subr.mxu1 %v242_v25  ;;  %v240_v34 = vld [vmem:[%s922_s2 + $0x160] sm:$0xff]  ;;  %v218_v36 = vld [vmem:[%s922_s2 + $0xb0] sm:$0xff]  ;;  %v239_v37 = vld [vmem:[%s922_s2 + $0x158] sm:$0xff] }
   0xd   :  { %425 = vmatpush3.msra.mxu0 %v209_v16  ;;  %479 = vmatpush3.msra.mxu1 %v242_v25  ;;  %v202_v38 = vld [vmem:[%s922_s2 + $0x30] sm:$0xff]  ;;  %v217_v39 = vld [vmem:[%s922_s2 + $0xa8] sm:$0xff]  ;;  %v216_v42 = vld [vmem:[%s922_s2 + $0xa0] sm:$0xff]  ;;  %v932_v16 = vmov 0 }
   0xe   :  { %528 = vset.pattern.permute.xlu1 %v567_v9  ;;  %32 = vperm.xlu0 %525, %v611_v8   ;;  %v238_v40 = vld [vmem:[%s922_s2 + $0x150] sm:$0xff]  ;;  %v201_v41 = vld [vmem:[%s922_s2 + $0x28] sm:$0xff]  ;;  %v200_v44 = vld [vmem:[%s922_s2 + $0x20] sm:$0xff] }
   0xf   :  { %95 = vperm.xlu1 %528, %v602_v4   ;;  %426 = vmatprep.subr.mxu0 %v224_v18  ;;  %v237_v43 = vld [vmem:[%s922_s2 + $0x148] sm:$0xff]  ;;  %v215_v45 = vld [vmem:[%s922_s2 + $0x98] sm:$0xff]  ;;  %v236_v46 = vld [vmem:[%s922_s2 + $0x140] sm:$0xff] }
  0x10   :  { %427 = vmatpush3.msra.mxu0 %v208_v19  ;;  %480 = vmatprep.subr.mxu1 %v241_v31  ;;  %v199_v47 = vld [vmem:[%s922_s2 + $0x18] sm:$0xff]  ;;  %v214_v48 = vld [vmem:[%s922_s2 + $0x90] sm:$0xff]  ;;  %v213_v51 = vld [vmem:[%s922_s2 + $0x88] sm:$0xff] }
  0x11   :  { %428 = vmatprep.subr.mxu0 %v223_v21  ;;  %481 = vmatpush3.msra.mxu1 %v241_v31  ;;  %v235_v49 = vld [vmem:[%s922_s2 + $0x138] sm:$0xff]  ;;  %v198_v50 = vld [vmem:[%s922_s2 + $0x10] sm:$0xff]  ;;  %v197_v53 = vld [vmem:[%s922_s2 + $0x8] sm:$0xff]  ;;  %v940_v21 = vmov 0 }
  0x12   :  { %531 = vset.pattern.permute.xlu0 %v563_v2  ;;  %429 = vmatpush3.msra.mxu0 %v207_v22  ;;  %v234_v52 = vld [vmem:[%s922_s2 + $0x130] sm:$0xff]  ;;  %v212_v54 = vld [vmem:[%s922_s2 + $0x80] sm:$0xff]  ;;  %v233_v55 = vld [vmem:[%s922_s2 + $0x128] sm:$0xff] }
  0x13   :  { %529 = vset.pattern.permute.xlu1 %v564_v3  ;;  %62 = vperm.xlu0 %531, %v611_v8   ;;  %v196_v56 = vld [vmem:[%s922_s2] sm:$0xff]  ;;  %v231_v58 = vld [vmem:[%s922_s2 + $0x118] sm:$0xff]  ;;  %v230_v59 = vld [vmem:[%s922_s2 + $0x110] sm:$0xff] }
  0x14   :  { %44 = vperm.xlu1 %529, %v611_v8   ;;  %430 = vmatprep.subr.mxu0 %v222_v24  ;;  %v232_v57 = vld [vmem:[%s922_s2 + $0x120] sm:$0xff]  ;;  %v229_v60 = vld [vmem:[%s922_s2 + $0x108] sm:$0xff] }
  0x15   :  { %431 = vmatpush3.msra.mxu0 %v206_v26  ;;  %482 = vmatprep.subr.mxu1 %v240_v34  ;;  %v228_v61 = vld [vmem:[%s922_s2 + $0x100] sm:$0xff]  ;;  %s573_s2 = smov [#allocation2]  }
  0x16   :  { %432 = vmatprep.subr.mxu0 %v221_v27  ;;  %483 = vmatpush3.msra.mxu1 %v240_v34  ;;  %s402_s25 = sshll.u32 %s573_s2, 4  ;;  %s403_s25 = int_to_ptr.vmem [resolvable:$true] %s402_s25 }
  0x17   :  { %534 = vset.pattern.permute.xlu0 %v568_v15  ;;  %433 = vmatpush3.msra.mxu0 %v205_v29  ;;  %s541_s26 = scalar_lea.vmem %s403_s25, 256  ;;  %p546_p1 = scmp.lt.s32.totalorder %s403_s25, %s403_s25 }
  0x18   :  { %530 = vset.pattern.permute.xlu1 %v569_v17  ;;  %149 = vperm.xlu0 %534, %v602_v4   ;;  %p542_p0 = scmp.ne.s32.totalorder %s403_s25, %s541_s26  ;;  %p547_p2 = scmp.lt.s32.totalorder %s541_s26, %s541_s26 }
  0x19   :  { %113 = vperm.xlu1 %530, %v602_v4   ;;  %434 = vmatprep.subr.mxu0 %v220_v30  ;;  %v572_v30 = vmov 0.0  }
  0x1a   :  { %435 = vmatpush3.msra.mxu0 %v204_v32  ;;  %484 = vmatprep.subr.mxu1 %v239_v37  ;;  %p548_p3 = por %p547_p2, %p546_p1 }
  0x1b   :  { %436 = vmatprep.subr.mxu0 %v219_v33  ;;  %485 = vmatpush3.msra.mxu1 %v239_v37 }
  0x1c   :  { %537 = vset.pattern.permute.xlu0 %v569_v17  ;;  %437 = vmatpush3.msra.mxu0 %v203_v35  ;;  %v934_v17 = vmov 0  ;;  %p549_p4 = pnand %p548_p3, %p542_p0 }
  0x1d   :  { %532 = vset.pattern.permute.xlu1 %v570_v23  ;;  %116 = vperm.xlu0 %537, %v611_v8  }
  0x1e   :  { %131 = vperm.xlu1 %532, %v602_v4   ;;  %438 = vmatprep.subr.mxu0 %v218_v36 }
  0x1f   :  { %439 = vmatpush3.msra.mxu0 %v202_v38  ;;  %486 = vmatprep.subr.mxu1 %v238_v40 }
  0x20   :  { %440 = vmatprep.subr.mxu0 %v217_v39  ;;  %487 = vmatpush3.msra.mxu1 %v238_v40 }
  0x21   :  { %540 = vset.pattern.permute.xlu0 %v571_v28  ;;  %441 = vmatpush3.msra.mxu0 %v201_v41 }
  0x22   :  { %533 = vset.pattern.permute.xlu1 %v565_v6  ;;  %170 = vperm.xlu0 %540, %v611_v8  }
  0x23   :  { %80 = vperm.xlu1 %533, %v611_v8   ;;  %442 = vmatprep.subr.mxu0 %v216_v42 }
  0x24   :  { %488 = vmatprep.subr.mxu1 %v237_v43  ;;  %443 = vmatpush3.msra.mxu0 %v200_v44 }
  0x25   :  { %489 = vmatpush3.msra.mxu1 %v237_v43  ;;  %444 = vmatprep.subr.mxu0 %v215_v45 }
  0x26   :  { %490 = vmatprep.subr.mxu1 %v236_v46  ;;  %445 = vmatpush3.msra.mxu0 %v199_v47 }
  0x27   :  { %535 = vset.pattern.permute.xlu1 %v567_v9  ;;  %491 = vmatpush3.msra.mxu1 %v236_v46 }
  0x28   :  { %98 = vperm.xlu1 %535, %v611_v8   ;;  %446 = vmatprep.subr.mxu0 %v214_v48 }
  0x29   :  { %492 = vmatprep.subr.mxu1 %v235_v49  ;;  %447 = vmatpush3.msra.mxu0 %v198_v50 }
  0x2a   :  { %493 = vmatpush3.msra.mxu1 %v235_v49  ;;  %448 = vmatprep.subr.mxu0 %v213_v51 }
  0x2b   :  { %494 = vmatprep.subr.mxu1 %v234_v52  ;;  %449 = vmatpush3.msra.mxu0 %v197_v53 }
  0x2c   :  { %536 = vset.pattern.permute.xlu1 %v571_v28  ;;  %495 = vmatpush3.msra.mxu1 %v234_v52 }
  0x2d   :  { %167 = vperm.xlu1 %536, %v602_v4   ;;  %450 = vmatprep.subr.mxu0 %v212_v54  ;;  %v780_v4 = vadd.s32 128, %v777_v1 }
  0x2e   :  { %496 = vmatprep.subr.mxu1 %v233_v55  ;;  %451 = vmatpush3.msra.mxu0 %v196_v56 }
  0x2f   :  { %497 = vmatpush3.msra.mxu1 %v233_v55 }
  0x30   :  { %498 = vmatprep.subr.mxu1 %v232_v57 }
  0x31   :  { %538 = vset.pattern.permute.xlu1 %v570_v23  ;;  %499 = vmatpush3.msra.mxu1 %v232_v57 }
  0x32   :  { %134 = vperm.xlu1 %538, %v611_v8   ;;  %500 = vmatprep.subr.mxu1 %v231_v58 }
  0x33   :  { %501 = vmatpush3.msra.mxu1 %v231_v58 }
  0x34   :  { %502 = vmatprep.subr.mxu1 %v230_v59 }
  0x35   :  { %503 = vmatpush3.msra.mxu1 %v230_v59 }
  0x36   :  { %539 = vset.pattern.permute.xlu1 %v568_v15  ;;  %504 = vmatprep.subr.mxu1 %v229_v60  ;;  %v930_v15 = vmov 0 }
  0x37   :  { %152 = vperm.xlu1 %539, %v611_v8   ;;  %505 = vmatpush3.msra.mxu1 %v229_v60 }
  0x38   :  { %506 = vmatprep.subr.mxu1 %v228_v61 }
  0x39   :  { %507 = vmatpush3.msra.mxu1 %v228_v61 }
  0x80   :  { %v60_v63 = vpop.permute.xlu1 %59  ;;  %v42_v0 = vpop.permute.xlu0 %41 }
  0x81   :  { %vm46_vm0 = vcmp.eq.s32.totalorder %v777_v1, %v42_v0  ;;  %vm47_vm2 = vcmp.eq.s32.totalorder %v780_v4, %v42_v0  ;;  %vm48_vm4 = vcmp.eq.s32.totalorder %v783_v5, %v42_v0  ;;  %vm64_vm8 = vcmp.eq.s32.totalorder %v777_v1, %v60_v63 }
  0x82   :  { %vm65_vm10 = vcmp.eq.s32.totalorder %v780_v4, %v60_v63  ;;  %vm66_vm12 = vcmp.eq.s32.totalorder %v783_v5, %v60_v63 }
  0x85   :  { %v78_v2 = vpop.permute.xlu1 %77  ;;  %v30_v3 = vpop.permute.xlu0 %29 }
  0x86   :  { %vm34_vm1 = vcmp.eq.s32.totalorder %v777_v1, %v30_v3  ;;  %vm35_vm3 = vcmp.eq.s32.totalorder %v780_v4, %v30_v3  ;;  %vm36_vm5 = vcmp.eq.s32.totalorder %v783_v5, %v30_v3  ;;  %vm82_vm14 = vcmp.eq.s32.totalorder %v777_v1, %v78_v2 }
  0x87   :  { %vm52_vm6 = vmor %vm34_vm1, %vm46_vm0  ;;  %vm83_vm0 = vcmp.eq.s32.totalorder %v780_v4, %v78_v2 }
  0x88   :  { %vm53_vm7 = vmor %vm35_vm3, %vm47_vm2  ;;  %vm84_vm3 = vcmp.eq.s32.totalorder %v783_v5, %v78_v2 }
  0x89   :  { %vm54_vm9 = vmor %vm36_vm5, %vm48_vm4  ;;  %v33_v7 = vpop.permute.xlu0 %32 }
  0x8a   :  { %v96_v6 = vpop.permute.xlu1 %95  ;;  %vm70_vm11 = vmor %vm52_vm6, %vm64_vm8  ;;  %vm37_vm8 = vcmp.eq.s32.totalorder %v777_v1, %v33_v7 }
  0x8b   :  { %vm71_vm13 = vmor %vm53_vm7, %vm65_vm10  ;;  %vm100_vm2 = vcmp.eq.s32.totalorder %v777_v1, %v96_v6  ;;  %vm101_vm5 = vcmp.eq.s32.totalorder %v780_v4, %v96_v6  ;;  %vm102_vm10 = vcmp.eq.s32.totalorder %v783_v5, %v96_v6 }
  0x8c   :  { %vm72_vm15 = vmor %vm54_vm9, %vm66_vm12 }
  0x8d   :  { %vm88_vm1 = vmor %vm70_vm11, %vm82_vm14  ;;  %vm38_vm11 = vcmp.eq.s32.totalorder %v780_v4, %v33_v7  ;;  %vm39_vm14 = vcmp.eq.s32.totalorder %v783_v5, %v33_v7 }
  0x8e   :  { %vm89_vm4 = vmor %vm71_vm13, %vm83_vm0  ;;  %v63_v9 = vpop.permute.xlu0 %62 }
  0x8f   :  { %v45_v8 = vpop.permute.xlu1 %44  ;;  %vm90_vm6 = vmor %vm72_vm15, %vm84_vm3  ;;  %vm67_vm3 = vcmp.eq.s32.totalorder %v777_v1, %v63_v9 }
  0x90   :  { %vm49_vm7 = vcmp.eq.s32.totalorder %v777_v1, %v45_v8  ;;  %vm802_vm9 = vmor %vm88_vm1, %vm100_vm2  ;;  %vm50_vm12 = vcmp.eq.s32.totalorder %v780_v4, %v45_v8  ;;  %vm51_vm15 = vcmp.eq.s32.totalorder %v783_v5, %v45_v8 }
  0x91   :  { %v925_v11 = vsel %vm802_vm9, 4294967295, %v924_v11  ;;  %vm808_vm13 = vmor %vm89_vm4, %vm101_vm5  ;;  %vm68_vm9 = vcmp.eq.s32.totalorder %v780_v4, %v63_v9  ;;  %vm69_vm5 = vcmp.eq.s32.totalorder %v783_v5, %v63_v9 }
  0x92   :  { %v927_v12 = vsel %vm808_vm13, 4294967295, %v926_v12  ;;  %vm55_vm0 = vmor %vm37_vm8, %vm49_vm7 }
  0x93   :  { %vm815_vm1 = vmor %vm90_vm6, %vm102_vm10  ;;  %v150_v18 = vpop.permute.xlu0 %149 }
  0x94   :  { %v114_v10 = vpop.permute.xlu1 %113  ;;  %vm56_vm2 = vmor %vm38_vm11, %vm50_vm12  ;;  %vm936_vm12 = vnez %v925_v11 }
  0x95   :  { %vm57_vm4 = vmor %vm39_vm14, %vm51_vm15  ;;  %vm118_vm7 = vcmp.eq.s32.totalorder %v777_v1, %v114_v10  ;;  %vm119_vm6 = vcmp.eq.s32.totalorder %v780_v4, %v114_v10 }
  0x96   :  { %vm821_vm13 = vmor %vm55_vm0, %vm67_vm3  ;;  %vm120_vm0 = vcmp.eq.s32.totalorder %v783_v5, %v114_v10 }
  0x97   :  { %v931_v15 = vsel %vm821_vm13, 4294967295, %v930_v15  ;;  %vm826_vm8 = vmor %vm56_vm2, %vm68_vm9  ;;  %vm937_vm9 = vnez %v927_v12 }
  0x98   :  { %v933_v16 = vsel %vm826_vm8, 4294967295, %v932_v16  ;;  %vm831_vm10 = vmor %vm57_vm4, %vm69_vm5  ;;  %vm155_vm5 = vcmp.eq.s32.totalorder %v780_v4, %v150_v18  ;;  %v117_v26 = vpop.permute.xlu0 %116 }
  0x99   :  { %v132_v14 = vpop.permute.xlu1 %131  ;;  %v935_v17 = vsel %vm831_vm10, 4294967295, %v934_v17  ;;  %vm124_vm14 = vmor %vm936_vm12, %vm118_vm7 }
  0x9a   :  { %vm137_vm11 = vcmp.eq.s32.totalorder %v780_v4, %v132_v14  ;;  %vm136_vm15 = vcmp.eq.s32.totalorder %v777_v1, %v132_v14  ;;  %vm125_vm3 = vmor %vm937_vm9, %vm119_vm6  ;;  %vm138_vm2 = vcmp.eq.s32.totalorder %v783_v5, %v132_v14  ;;  %vm942_vm9 = vnez %v931_v15 }
  0x9b   :  { %vm143_vm4 = vmor %vm125_vm3, %vm137_vm11  ;;  %vm154_vm3 = vcmp.eq.s32.totalorder %v777_v1, %v150_v18 }
  0x9c   :  { %vm844_vm10 = vmor %vm124_vm14, %vm136_vm15  ;;  %vm156_vm15 = vcmp.eq.s32.totalorder %v783_v5, %v150_v18 }
  0x9d   :  { %v939_v20 = vsel %vm844_vm10, 4294967295, %v938_v20  ;;  %vm126_vm12 = vmor %vm815_vm1, %vm120_vm0  ;;  %vm943_vm10 = vnez %v933_v16  ;;  %vm944_vm1 = vnez %v935_v17  ;;  %v171_v35 = vpop.permute.xlu0 %170 }
  0x9e   :  { %v81_v19 = vpop.permute.xlu1 %80  ;;  %vm853_vm6 = vmor %vm143_vm4, %vm155_vm5 }
  0x9f   :  { %vm85_vm8 = vcmp.eq.s32.totalorder %v777_v1, %v81_v19  ;;  %vm86_vm7 = vcmp.eq.s32.totalorder %v780_v4, %v81_v19  ;;  %vm87_vm13 = vcmp.eq.s32.totalorder %v783_v5, %v81_v19  ;;  %v941_v21 = vsel %vm853_vm6, 4294967295, %v940_v21  ;;  %vm144_vm11 = vmor %vm126_vm12, %vm138_vm2 }
  0xa0   :  { %vm91_vm14 = vmor %vm942_vm9, %vm85_vm8  ;;  %vm947_vm12 = vnez %v939_v20 }
  0xa1   :  { %vm92_vm0 = vmor %vm943_vm10, %vm86_vm7 }
  0xa2   :  { %vm93_vm4 = vmor %vm944_vm1, %vm87_vm13  ;;  %vm956_vm1 = vnez %v941_v21 }
  0xa3   :  { %v99_v22 = vpop.permute.xlu1 %98  ;;  %vm867_vm2 = vmor %vm144_vm11, %vm156_vm15 }
  0xa4   :  { %vm103_vm5 = vcmp.eq.s32.totalorder %v777_v1, %v99_v22  ;;  %vm104_vm6 = vcmp.eq.s32.totalorder %v780_v4, %v99_v22  ;;  %vm105_vm8 = vcmp.eq.s32.totalorder %v783_v5, %v99_v22  ;;  %vm874_vm9 = vmor %vm947_vm12, %vm154_vm3  ;;  %vm123_vm12 = vcmp.eq.s32.totalorder %v783_v5, %v117_v26 }
  0xa5   :  { %vm878_vm10 = vmor %vm91_vm14, %vm103_vm5  ;;  %vm121_vm14 = vcmp.eq.s32.totalorder %v777_v1, %v117_v26 }
  0xa6   :  { %vm882_vm13 = vmor %vm92_vm0, %vm104_vm6  ;;  %vm122_vm6 = vcmp.eq.s32.totalorder %v780_v4, %v117_v26 }
  0xa7   :  { %vm888_vm15 = vmor %vm93_vm4, %vm105_vm8 }
  0xa8   :  { %v168_v27 = vpop.permute.xlu1 %167  ;;  %vm127_vm8 = vmor %vm878_vm10, %vm121_vm14 }
  0xa9   :  { %vm173_vm7 = vcmp.eq.s32.totalorder %v780_v4, %v168_v27  ;;  %vm174_vm11 = vcmp.eq.s32.totalorder %v783_v5, %v168_v27  ;;  %vm172_vm3 = vcmp.eq.s32.totalorder %v777_v1, %v168_v27 }
  0xaa   :  { %vm179_vm5 = vmor %vm956_vm1, %vm173_vm7 }
  0xab   :  { %v415_v31 = vsel %vm179_vm5, 1.0, %v572_v30  ;;  %vm180_vm0 = vmor %vm867_vm2, %vm174_vm11 }
  0xac   :  { %308 = vmatprep.mubr.f32.mxu0 %v415_v31  ;;  %v416_v32 = vsel %vm180_vm0, 1.0, %v572_v30  ;;  %vm178_vm4 = vmor %vm874_vm9, %vm172_vm3 }
  0xad   :  { %v135_v33 = vpop.permute.xlu1 %134  ;;  %508 = vmatprep.mubr.f32.mxu1 %v416_v32  ;;  %v414_v34 = vsel %vm178_vm4, 1.0, %v572_v30  ;;  %vm128_vm1 = vmor %vm882_vm13, %vm122_vm6  ;;  %vm176_vm6 = vcmp.eq.s32.totalorder %v780_v4, %v171_v35 }
  0xae   :  { %vm139_vm7 = vcmp.eq.s32.totalorder %v777_v1, %v135_v33  ;;  %vm140_vm2 = vcmp.eq.s32.totalorder %v780_v4, %v135_v33  ;;  %309 = vmatmul.mubr.f32.vlgmr.msra.gmra.mxu0 %v414_v34  ;;  %vm129_vm11 = vmor %vm888_vm15, %vm123_vm12  ;;  %vm141_vm5 = vcmp.eq.s32.totalorder %v783_v5, %v135_v33  ;;  %vm177_vm15 = vcmp.eq.s32.totalorder %v783_v5, %v171_v35 }
  0xaf   :  { %vm145_vm0 = vmor %vm127_vm8, %vm139_vm7  ;;  %vm175_vm8 = vcmp.eq.s32.totalorder %v777_v1, %v171_v35 }
  0xb0   :  { %vm146_vm9 = vmor %vm128_vm1, %vm140_vm2 }
  0xb1   :  { %vm147_vm10 = vmor %vm129_vm11, %vm141_vm5  ;;  %vm394_vm5 = vcmask 261120  }
  0xb2   :  { %v153_v36 = vpop.permute.xlu1 %152 }
  0xb3   :  { %vm157_vm3 = vcmp.eq.s32.totalorder %v777_v1, %v153_v36  ;;  %vm158_vm14 = vcmp.eq.s32.totalorder %v780_v4, %v153_v36  ;;  %vm159_vm4 = vcmp.eq.s32.totalorder %v783_v5, %v153_v36 }
  0xb4   :  { %vm163_vm13 = vmor %vm145_vm0, %vm157_vm3 }
  0xb5   :  { %vm164_vm12 = vmor %vm146_vm9, %vm158_vm14 }
  0xb6   :  { %vm165_vm7 = vmor %vm147_vm10, %vm159_vm4 }
  0xb7   :  { %vm182_vm1 = vmor %vm164_vm12, %vm176_vm6 }
  0xb8   :  { %v418_v37 = vsel %vm182_vm1, 1.0, %v572_v30  ;;  %vm183_vm2 = vmor %vm165_vm7, %vm177_vm15 }
  0xb9   :  { %313 = vmatprep.mubr.f32.mxu0 %v418_v37  ;;  %v419_v38 = vsel %vm183_vm2, 1.0, %v572_v30  ;;  %vm181_vm11 = vmor %vm163_vm13, %vm175_vm8 }
  0xba   :  { %509 = vmatmul.mubr.f32.vlgmr.msra.gmra.mxu1 %v419_v38  ;;  %v417_v39 = vsel %vm181_vm11, 1.0, %v572_v30 }
  0xbb   :  { %314 = vmatmul.mubr.f32.gmra.mxu0 %v417_v39 }
 0x16e   :  { %v452_v40 = vpop.f32.mrf.mxu0 }
 0x170   :  { %v453_v41 = vpop.f32.mrf.mxu0 }
 0x171   :  { %v454_v43 = vadd.f32 %v453_v41, %v452_v40 }
 0x17a   :  { %v510_v42 = vpop.f32.mrf.mxu1 }
 0x17b   :  { %v455_v44 = vpop.f32.mrf.mxu0 }
 0x17c   :  { %v385_v45 = vpop.f32.mrf.mxu1 }
 0x17d   :  { %v386_v46 = vadd.f32 %v454_v43, %v385_v45  ;;  %v456_v47 = vpop.f32.mrf.mxu0 }
 0x17e   :  { %v457_v48 = vadd.f32 %v456_v47, %v455_v44 }
 0x17f   :  { %395 = vst.msk [vmem:[#allocation2] sm:$0xff] %vm394_vm5, %v386_v46 }
 0x180   :  { %v391_v49 = vadd.f32 %v510_v42, %v457_v48 }
 0x182   :  { %396 = vst.msk [vmem:[#allocation2 + $0x8] sm:$0xff] %vm394_vm5, %v391_v49 }
 0x183   :  { %552 = shalt.err (!%p549_p4)
}
 0x184   :  { %s574_s27 = smov 128   ;;  %s575_s28 = smov 8  }
 0x185   :  { %408 = dma.vmem_to_hbm [thread:$0]  %s403_s25, 256, %s923_s3, [#allocation3], %s574_s27, %s574_s27, %s575_s28  }
 0x186   :  { %561 = dma.done.wait [#allocation3], 256  }
 0x187   :  { %562 = vsyncadd [#allocation3], 4294967040 }
 0x188   :  { %412 = vsyncpa [#allocation3], 1 }

</bundles_post_ra>
